<compile_context>
chip_gen: v5e
topology: v5e:2x2
jax: 0.10.0
libtpu: 0.0.40
codegen_flags: <defaults>
</compile_context>

<pallas_src>
import numpy as np
import jax
import jax.numpy as jnp
from jax import lax
from jax.experimental import pallas as pl
from jax.experimental.pallas import tpu as pltpu


def _round_up(x: int, m: int) -> int:
    return ((x + m - 1) // m) * m


def _sublane(itemsize: int) -> int:
    # sublane packing multiple by element size (f32 -> 8, bf16 -> 16, i8 -> 32)
    return {4: 8, 2: 16, 1: 32}.get(itemsize, 8)


def _make_custom_clip_kernel(scale: float, bias: float, ratio: float, mm_dtype):
    """Build the kernel with config scalars baked in as constants."""
    scale = float(scale)
    bias = float(bias)
    ratio = float(ratio)

    def kernel(img_ref, txt_ref, w1_ref, w2_ref, out_ref, imgn_ref):
        # j == 0: run the adapter + residual blend + L2-normalize for this
        # image tile once and cache it in VMEM scratch; every text tile j > 0
        # reuses it.  Residents (txt/W1/W2) are already in mm_dtype (pre-cast
        # in the wrapper) -> no per-step VPU cast of resident blocks.
        @pl.when(pl.program_id(1) == 0)
        def _():
            img = img_ref[...].astype(jnp.float32)                     # [TM, D]
            h = jnp.maximum(
                jnp.dot(img.astype(mm_dtype), w1_ref[...],
                        preferred_element_type=jnp.float32), 0.0)      # [TM, H]
            a = jnp.maximum(
                jnp.dot(h.astype(mm_dtype), w2_ref[...],
                        preferred_element_type=jnp.float32), 0.0)      # [TM, D]
            mixed = ratio * a + (1.0 - ratio) * img                    # f32 VPU
            inv_n = lax.rsqrt(jnp.sum(mixed * mixed, axis=-1, keepdims=True))
            imgn_ref[...] = (mixed * inv_n).astype(mm_dtype)

        # Cosine-similarity logits: plain [TM, D] @ [D, TN] MXU matmul
        # (text pre-transposed in the wrapper -> no in-kernel vxpose).
        logits = jnp.dot(imgn_ref[...], txt_ref[...],
                         preferred_element_type=jnp.float32)           # [TM, TN]

        # Fused affine epilogue: scale*(x - mean) == scale*x + bias (f32 VPU).
        out_ref[...] = (scale * logits + bias).astype(out_ref.dtype)

    return kernel


def custom_clip_forward(image_features, text_features, w1, w2,
                        *, ratio, mean_score, logit_scale,
                        block_m: int = 256, block_n: int = 512,
                        mm_dtype=None):
    N, D = image_features.shape
    M, D2 = text_features.shape
    assert D == D2
    H = w1.shape[1]
    assert w1.shape == (D, H) and w2.shape == (H, D)

    # Auto dtype policy: bf16 MXU math (f32 acc) at CLIP/retrieval scale,
    # exact f32 otherwise (keeps the 1e-5 reference tolerance for small D).
    if mm_dtype is None:
        mm_dtype = jnp.bfloat16 if (D >= 512 and M >= 512) else jnp.float32
    mm_dtype = jnp.dtype(mm_dtype)

    scale = float(np.exp(logit_scale))          # torch: self.logit_scale.exp()
    bias = -scale * float(mean_score)

    # --- Hoisted text path (once per call, not per grid step) -----------------
    # L2-normalize (no epsilon, matching torch), transpose to [D, M], cast to
    # the matmul dtype, then pad the text axis to a lane-dense multiple of TN.
    txt = text_features.astype(jnp.float32)
    txt_n = txt * lax.rsqrt(jnp.sum(txt * txt, axis=-1, keepdims=True))
    TN = min(_round_up(block_n, 128), _round_up(max(M, 1), 128))
    Mp = _round_up(max(M, 1), TN)
    txt_nt = txt_n.T.astype(mm_dtype)                                   # [D, M]
    if Mp != M:
        txt_nt = jnp.pad(txt_nt, ((0, 0), (0, Mp - M)))                 # zeros
    num_j = Mp // TN

    # --- Image tiling ----------------------------------------------------------
    # TM rounded to the dtype sublane multiple; padded rows (zero-norm) produce
    # NaN in the padded output region only, which is sliced off below.
    sub = _sublane(image_features.dtype.itemsize)
    TM = min(_round_up(block_m, sub), _round_up(N, sub))
    Np = _round_up(N, TM)
    img = image_features
    if Np != N:
        img = jnp.pad(img, ((0, Np - N), (0, 0)))
    num_i = Np // TM

    # Pre-cast the resident weights once (no per-step cast inside the kernel).
    w1c = w1.astype(mm_dtype)
    w2c = w2.astype(mm_dtype)

    # --- VMEM budget (re-derived for v7x: 64 MiB physical / 32 MiB scoped) ----
    mm_bytes = mm_dtype.itemsize
    img_bytes = img.dtype.itemsize
    footprint = (2 * TM * D * img_bytes                       # img, double buf
                 + (1 if num_j == 1 else 2) * D * TN * mm_bytes  # text tile
                 + 2 * D * H * mm_bytes                       # W1 + W2, single
                 + 2 * TM * TN * 4                            # out, double buf
                 + TM * D * mm_bytes)                         # img_n scratch
    vmem_limit = int(min(64 << 20, max(int(footprint * 1.5) + (2 << 20),
                                       16 << 20)))

    kernel = _make_custom_clip_kernel(scale, bias, ratio, mm_dtype)
    out_shape = jax.ShapeDtypeStruct((Np, Mp), jnp.float32)

    def _call(use_single_buffer_residents: bool):
        resident_kw = ({"pipeline_mode": pl.Buffered(1)}
                       if use_single_buffer_residents else {})
        # Text tile index varies with j -> only single-buffer it when it is
        # truly resident (num_j == 1); otherwise keep default double buffer.
        txt_kw = resident_kw if num_j == 1 else {}
        return pl.pallas_call(
            kernel,
            out_shape=out_shape,
            grid=(num_i, num_j),
            in_specs=[
                pl.BlockSpec((TM, D), lambda i, j: (i, 0)),             # image
                pl.BlockSpec((D, TN), lambda i, j: (0, j), **txt_kw),   # text^T
                pl.BlockSpec((D, H), lambda i, j: (0, 0), **resident_kw),  # W1
                pl.BlockSpec((H, D), lambda i, j: (0, 0), **resident_kw),  # W2
            ],
            out_specs=pl.BlockSpec((TM, TN), lambda i, j: (i, j)),
            scratch_shapes=[pltpu.VMEM((TM, D), mm_dtype)],             # img_n
            compiler_params=pltpu.CompilerParams(
                # i: batch, sharded across TensorCores on v7x (verify with
                # xprof that both TCs are used); j: carries img_n scratch.
                dimension_semantics=("parallel", "arbitrary"),
                vmem_limit_bytes=vmem_limit),
        )(img, txt_nt, w1c, w2c)

    try:
        logits = _call(True)
    except Exception:
        # Fallback: installed JAX doesn't support pipeline_mode on pallas_call
        # BlockSpecs -> run with default double-buffered residents.
        logits = _call(False)

    # Only slice when padding actually happened (avoids an extra full-output
    # HBM read+write pass for already-aligned shapes).
    if Np != N or Mp != M:
        logits = logits[:N, :M]
    # torch .squeeze(-1): only drops the last axis if it has size 1.
    if M == 1:
        logits = jnp.squeeze(logits, axis=-1)
    return logits


def _reference_forward(image_features, text_features, w1, w2,
                       *, ratio, mean_score, logit_scale):
    """Plain-JAX reference mirroring the PyTorch module."""
    img = image_features.astype(jnp.float32)
    txt = text_features.astype(jnp.float32)
    h = jnp.maximum(img @ w1, 0.0)
    a = jnp.maximum(h @ w2, 0.0)
    mixed = ratio * a + (1.0 - ratio) * img
    img_n = mixed / jnp.linalg.norm(mixed, axis=-1, keepdims=True)
    txt_n = txt / jnp.linalg.norm(txt, axis=-1, keepdims=True)
    logits = img_n @ txt_n.T
    logits = np.exp(logit_scale) * (logits - mean_score)
    if logits.shape[-1] == 1:
        logits = jnp.squeeze(logits, axis=-1)
    return logits


if __name__ == "__main__":
    # Small shapes consistent with the module: embedding_dim=32, reduction=2.
    N, M, D = 8, 8, 32
    cfg = dict(logit_scale=2.0, embedding_dim=D, ratio=0.2, mean_score=0.1)

    key = jax.random.PRNGKey(0)
    k_img, k_txt, k_w1, k_w2 = jax.random.split(key, 4)

    image_features = jax.random.normal(k_img, (N, D), dtype=jnp.float32)
    text_features = jax.random.normal(k_txt, (M, D), dtype=jnp.float32)
    # torch Linear stores (out, in); weights here are pre-transposed to (in, out)
    w1 = jax.random.normal(k_w1, (D, D // 2), dtype=jnp.float32) * 0.1
    w2 = jax.random.normal(k_w2, (D // 2, D), dtype=jnp.float32) * 0.1

    ref = _reference_forward(
        image_features, text_features, w1, w2,
        ratio=cfg["ratio"], mean_score=cfg["mean_score"],
        logit_scale=cfg["logit_scale"])

    # 1) Default (f32 MXU math at this small D) — tight tolerance.
    out = custom_clip_forward(
        image_features, text_features, w1, w2,
        ratio=cfg["ratio"], mean_score=cfg["mean_score"],
        logit_scale=cfg["logit_scale"])
    out = jax.block_until_ready(out)
    np.testing.assert_allclose(np.asarray(out), np.asarray(ref),
                               rtol=1e-5, atol=1e-5)

    # 2) bf16 MXU path (the v6e/v7x default at CLIP scale) — relaxed tolerance.
    out_bf16 = custom_clip_forward(
        image_features, text_features, w1, w2,
        ratio=cfg["ratio"], mean_score=cfg["mean_score"],
        logit_scale=cfg["logit_scale"], mm_dtype=jnp.bfloat16)
    out_bf16 = jax.block_until_ready(out_bf16)
    np.testing.assert_allclose(np.asarray(out_bf16), np.asarray(ref),
                               rtol=3e-2, atol=3e-2)

    # 3) M == 1 squeeze(-1) path.
    out1 = custom_clip_forward(
        image_features, text_features[:1], w1, w2,
        ratio=cfg["ratio"], mean_score=cfg["mean_score"],
        logit_scale=cfg["logit_scale"])
    out1 = jax.block_until_ready(out1)
    ref1 = _reference_forward(
        image_features, text_features[:1], w1, w2,
        ratio=cfg["ratio"], mean_score=cfg["mean_score"],
        logit_scale=cfg["logit_scale"])
    assert out1.shape == ref1.shape == (N,)
    np.testing.assert_allclose(np.asarray(out1), np.asarray(ref1),
                               rtol=1e-5, atol=1e-5)

    print("KERNEL_OK")
</pallas_src>

<mosaic_0001>
module attributes {stable_mosaic.version = 11 : i64} {
  func.func @kernel(%arg0: i32, %arg1: i32, %arg2: memref<8x32xf32, #tpu.memory_space<vmem>>, %arg3: memref<32x128xf32, #tpu.memory_space<vmem>>, %arg4: memref<32x16xf32, #tpu.memory_space<vmem>>, %arg5: memref<16x32xf32, #tpu.memory_space<vmem>>, %arg6: memref<8x128xf32, #tpu.memory_space<vmem>>, %arg7: memref<8x32xf32, #tpu.memory_space<vmem>>) attributes {dimension_semantics = [#tpu.dimension_semantics<parallel>, #tpu.dimension_semantics<arbitrary>], iteration_bounds = array<i64: 1, 1>, scalar_prefetch = 0 : i64, scratch_operands = 1 : i64, tpu.core_type = #tpu.core_type<tc>, window_params = [{transform_indices = @transform_0, window_bounds = array<i64: 8, 32>}, {pipeline_mode = #tpu.pipeline_mode<synchronous>, transform_indices = @transform_1, window_bounds = array<i64: 32, 128>}, {pipeline_mode = #tpu.pipeline_mode<synchronous>, transform_indices = @transform_2, window_bounds = array<i64: 32, 16>}, {pipeline_mode = #tpu.pipeline_mode<synchronous>, transform_indices = @transform_3, window_bounds = array<i64: 16, 32>}, {transform_indices = @transform_4, window_bounds = array<i64: 8, 128>}]} {
    %c0_i32 = arith.constant 0 : i32
    %0 = arith.cmpi eq, %arg1, %c0_i32 : i32
    %1 = arith.extui %0 : i1 to i32
    %c0_i32_0 = arith.constant 0 : i32
    %2 = arith.cmpi ne, %1, %c0_i32_0 : i32
    scf.if %2 {
      %c0_8 = arith.constant 0 : index
      %c0_9 = arith.constant 0 : index
      %11 = vector.load %arg2[%c0_8, %c0_9] : memref<8x32xf32, #tpu.memory_space<vmem>>, vector<8x32xf32>
      %c0_10 = arith.constant 0 : index
      %c0_11 = arith.constant 0 : index
      %12 = vector.load %arg4[%c0_10, %c0_11] : memref<32x16xf32, #tpu.memory_space<vmem>>, vector<32x16xf32>
      %cst_12 = arith.constant dense<0.000000e+00> : vector<8x16xf32>
      %13 = tpu.matmul %11, %12, %cst_12 {dimension_numbers = #tpu.dot_dimension_numbers<[1], [0], [0], [1], [0, 0, 1, 1], [], []>} : vector<8x32xf32>, vector<32x16xf32>, vector<8x16xf32> -> vector<8x16xf32>
      %cst_13 = arith.constant 0.000000e+00 : f32
      %14 = vector.broadcast %cst_13 : f32 to vector<8x16xf32>
      %15 = arith.maximumf %13, %14 : vector<8x16xf32>
      %c0_14 = arith.constant 0 : index
      %c0_15 = arith.constant 0 : index
      %16 = vector.load %arg5[%c0_14, %c0_15] : memref<16x32xf32, #tpu.memory_space<vmem>>, vector<16x32xf32>
      %cst_16 = arith.constant dense<0.000000e+00> : vector<8x32xf32>
      %17 = tpu.matmul %15, %16, %cst_16 {dimension_numbers = #tpu.dot_dimension_numbers<[1], [0], [0], [1], [0, 0, 1, 1], [], []>} : vector<8x16xf32>, vector<16x32xf32>, vector<8x32xf32> -> vector<8x32xf32>
      %cst_17 = arith.constant 0.000000e+00 : f32
      %18 = vector.broadcast %cst_17 : f32 to vector<8x32xf32>
      %19 = arith.maximumf %17, %18 : vector<8x32xf32>
      %cst_18 = arith.constant 2.000000e-01 : f32
      %20 = vector.broadcast %cst_18 : f32 to vector<8x32xf32>
      %21 = arith.mulf %20, %19 : vector<8x32xf32>
      %cst_19 = arith.constant 8.000000e-01 : f32
      %22 = vector.broadcast %cst_19 : f32 to vector<8x32xf32>
      %23 = arith.mulf %22, %11 : vector<8x32xf32>
      %24 = arith.addf %21, %23 : vector<8x32xf32>
      %25 = arith.mulf %24, %24 : vector<8x32xf32>
      %cst_20 = arith.constant dense<0.000000e+00> : vector<8xf32>
      %26 = vector.multi_reduction <add>, %25, %cst_20 [1] : vector<8x32xf32> to vector<8xf32>
      %27 = vector.shape_cast %26 : vector<8xf32> to vector<8x1xf32>
      %28 = math.rsqrt %27 : vector<8x1xf32>
      %29 = vector.broadcast %28 : vector<8x1xf32> to vector<8x32xf32>
      %30 = arith.mulf %24, %29 : vector<8x32xf32>
      %c0_21 = arith.constant 0 : index
      %c0_22 = arith.constant 0 : index
      %31 = vector.load %arg7[%c0_21, %c0_22] : memref<8x32xf32, #tpu.memory_space<vmem>>, vector<8x32xf32>
      tpu.vector_store %arg7[%c0_21, %c0_22], %30 {strides = array<i32>} : memref<8x32xf32, #tpu.memory_space<vmem>>, vector<8x32xf32>,
    } else {
    }
    %c0 = arith.constant 0 : index
    %c0_1 = arith.constant 0 : index
    %3 = vector.load %arg7[%c0, %c0_1] : memref<8x32xf32, #tpu.memory_space<vmem>>, vector<8x32xf32>
    %c0_2 = arith.constant 0 : index
    %c0_3 = arith.constant 0 : index
    %4 = vector.load %arg3[%c0_2, %c0_3] : memref<32x128xf32, #tpu.memory_space<vmem>>, vector<32x128xf32>
    %cst = arith.constant dense<0.000000e+00> : vector<8x128xf32>
    %5 = tpu.matmul %3, %4, %cst {dimension_numbers = #tpu.dot_dimension_numbers<[1], [0], [0], [1], [0, 0, 1, 1], [], []>} : vector<8x32xf32>, vector<32x128xf32>, vector<8x128xf32> -> vector<8x128xf32>
    %cst_4 = arith.constant 7.3890562 : f32
    %6 = vector.broadcast %cst_4 : f32 to vector<8x128xf32>
    %7 = arith.mulf %6, %5 : vector<8x128xf32>
    %cst_5 = arith.constant -0.738905608 : f32
    %8 = vector.broadcast %cst_5 : f32 to vector<8x128xf32>
    %9 = arith.addf %7, %8 : vector<8x128xf32>
    %c0_6 = arith.constant 0 : index
    %c0_7 = arith.constant 0 : index
    %10 = vector.load %arg6[%c0_6, %c0_7] : memref<8x128xf32, #tpu.memory_space<vmem>>, vector<8x128xf32>
    tpu.vector_store %arg6[%c0_6, %c0_7], %9 {strides = array<i32>} : memref<8x128xf32, #tpu.memory_space<vmem>>, vector<8x128xf32>,
    return
  }
  func.func @transform_0(%arg0: i32, %arg1: i32) -> (i32, i32) {
    %c0_i32 = arith.constant 0 : i32
    %c0_i32_0 = arith.constant 0 : i32
    return %arg0, %c0_i32 : i32, i32
  }
  func.func @transform_1(%arg0: i32, %arg1: i32) -> (i32, i32) {
    %c0_i32 = arith.constant 0 : i32
    %c0_i32_0 = arith.constant 0 : i32
    return %c0_i32, %arg1 : i32, i32
  }
  func.func @transform_2(%arg0: i32, %arg1: i32) -> (i32, i32) {
    %c0_i32 = arith.constant 0 : i32
    %c0_i32_0 = arith.constant 0 : i32
    %c0_i32_1 = arith.constant 0 : i32
    return %c0_i32, %c0_i32_0 : i32, i32
  }
  func.func @transform_3(%arg0: i32, %arg1: i32) -> (i32, i32) {
    %c0_i32 = arith.constant 0 : i32
    %c0_i32_0 = arith.constant 0 : i32
    %c0_i32_1 = arith.constant 0 : i32
    return %c0_i32, %c0_i32_0 : i32, i32
  }
  func.func @transform_4(%arg0: i32, %arg1: i32) -> (i32, i32) {
    %c0_i32 = arith.constant 0 : i32
    return %arg0, %arg1 : i32, i32
  }
}

module attributes {stable_mosaic.version = 11 : i64} {
  func.func @kernel(%arg0: i32, %arg1: i32, %arg2: memref<8x32xf32, #tpu.memory_space<vmem>>, %arg3: memref<32x128xf32, #tpu.memory_space<vmem>>, %arg4: memref<32x16xf32, #tpu.memory_space<vmem>>, %arg5: memref<16x32xf32, #tpu.memory_space<vmem>>, %arg6: memref<8x128xf32, #tpu.memory_space<vmem>>, %arg7: memref<8x32xf32, #tpu.memory_space<vmem>>) attributes {dimension_semantics = [#tpu.dimension_semantics<parallel>, #tpu.dimension_semantics<arbitrary>], iteration_bounds = array<i64: 1, 1>, scalar_prefetch = 0 : i64, scratch_operands = 1 : i64, tpu.core_type = #tpu.core_type<tc>, window_params = [{transform_indices = @transform_0, window_bounds = array<i64: 8, 32>}, {transform_indices = @transform_1, window_bounds = array<i64: 32, 128>}, {pipeline_mode = #tpu.pipeline_mode<synchronous>, transform_indices = @transform_2, window_bounds = array<i64: 32, 16>}, {pipeline_mode = #tpu.pipeline_mode<synchronous>, transform_indices = @transform_3, window_bounds = array<i64: 16, 32>}, {transform_indices = @transform_4, window_bounds = array<i64: 8, 128>}]} {
    %c0_i32 = arith.constant 0 : i32
    %0 = arith.cmpi eq, %arg1, %c0_i32 : i32
    %1 = arith.extui %0 : i1 to i32
    %c0_i32_0 = arith.constant 0 : i32
    %2 = arith.cmpi ne, %1, %c0_i32_0 : i32
    scf.if %2 {
      %c0_8 = arith.constant 0 : index
      %c0_9 = arith.constant 0 : index
      %11 = vector.load %arg2[%c0_8, %c0_9] : memref<8x32xf32, #tpu.memory_space<vmem>>, vector<8x32xf32>
      %c0_10 = arith.constant 0 : index
      %c0_11 = arith.constant 0 : index
      %12 = vector.load %arg4[%c0_10, %c0_11] : memref<32x16xf32, #tpu.memory_space<vmem>>, vector<32x16xf32>
      %cst_12 = arith.constant dense<0.000000e+00> : vector<8x16xf32>
      %13 = tpu.matmul %11, %12, %cst_12 {dimension_numbers = #tpu.dot_dimension_numbers<[1], [0], [0], [1], [0, 0, 1, 1], [], []>} : vector<8x32xf32>, vector<32x16xf32>, vector<8x16xf32> -> vector<8x16xf32>
      %cst_13 = arith.constant 0.000000e+00 : f32
      %14 = vector.broadcast %cst_13 : f32 to vector<8x16xf32>
      %15 = arith.maximumf %13, %14 : vector<8x16xf32>
      %c0_14 = arith.constant 0 : index
      %c0_15 = arith.constant 0 : index
      %16 = vector.load %arg5[%c0_14, %c0_15] : memref<16x32xf32, #tpu.memory_space<vmem>>, vector<16x32xf32>
      %cst_16 = arith.constant dense<0.000000e+00> : vector<8x32xf32>
      %17 = tpu.matmul %15, %16, %cst_16 {dimension_numbers = #tpu.dot_dimension_numbers<[1], [0], [0], [1], [0, 0, 1, 1], [], []>} : vector<8x16xf32>, vector<16x32xf32>, vector<8x32xf32> -> vector<8x32xf32>
      %cst_17 = arith.constant 0.000000e+00 : f32
      %18 = vector.broadcast %cst_17 : f32 to vector<8x32xf32>
      %19 = arith.maximumf %17, %18 : vector<8x32xf32>
      %cst_18 = arith.constant 2.000000e-01 : f32
      %20 = vector.broadcast %cst_18 : f32 to vector<8x32xf32>
      %21 = arith.mulf %20, %19 : vector<8x32xf32>
      %cst_19 = arith.constant 8.000000e-01 : f32
      %22 = vector.broadcast %cst_19 : f32 to vector<8x32xf32>
      %23 = arith.mulf %22, %11 : vector<8x32xf32>
      %24 = arith.addf %21, %23 : vector<8x32xf32>
      %25 = arith.mulf %24, %24 : vector<8x32xf32>
      %cst_20 = arith.constant dense<0.000000e+00> : vector<8xf32>
      %26 = vector.multi_reduction <add>, %25, %cst_20 [1] : vector<8x32xf32> to vector<8xf32>
      %27 = vector.shape_cast %26 : vector<8xf32> to vector<8x1xf32>
      %28 = math.rsqrt %27 : vector<8x1xf32>
      %29 = vector.broadcast %28 : vector<8x1xf32> to vector<8x32xf32>
      %30 = arith.mulf %24, %29 : vector<8x32xf32>
      %c0_21 = arith.constant 0 : index
      %c0_22 = arith.constant 0 : index
      %31 = vector.load %arg7[%c0_21, %c0_22] : memref<8x32xf32, #tpu.memory_space<vmem>>, vector<8x32xf32>
      tpu.vector_store %arg7[%c0_21, %c0_22], %30 {strides = array<i32>} : memref<8x32xf32, #tpu.memory_space<vmem>>, vector<8x32xf32>,
    } else {
    }
    %c0 = arith.constant 0 : index
    %c0_1 = arith.constant 0 : index
    %3 = vector.load %arg7[%c0, %c0_1] : memref<8x32xf32, #tpu.memory_space<vmem>>, vector<8x32xf32>
    %c0_2 = arith.constant 0 : index
    %c0_3 = arith.constant 0 : index
    %4 = vector.load %arg3[%c0_2, %c0_3] : memref<32x128xf32, #tpu.memory_space<vmem>>, vector<32x128xf32>
    %cst = arith.constant dense<0.000000e+00> : vector<8x128xf32>
    %5 = tpu.matmul %3, %4, %cst {dimension_numbers = #tpu.dot_dimension_numbers<[1], [0], [0], [1], [0, 0, 1, 1], [], []>} : vector<8x32xf32>, vector<32x128xf32>, vector<8x128xf32> -> vector<8x128xf32>
    %cst_4 = arith.constant 7.3890562 : f32
    %6 = vector.broadcast %cst_4 : f32 to vector<8x128xf32>
    %7 = arith.mulf %6, %5 : vector<8x128xf32>
    %cst_5 = arith.constant -0.738905608 : f32
    %8 = vector.broadcast %cst_5 : f32 to vector<8x128xf32>
    %9 = arith.addf %7, %8 : vector<8x128xf32>
    %c0_6 = arith.constant 0 : index
    %c0_7 = arith.constant 0 : index
    %10 = vector.load %arg6[%c0_6, %c0_7] : memref<8x128xf32, #tpu.memory_space<vmem>>, vector<8x128xf32>
    tpu.vector_store %arg6[%c0_6, %c0_7], %9 {strides = array<i32>} : memref<8x128xf32, #tpu.memory_space<vmem>>, vector<8x128xf32>,
    return
  }
  func.func @transform_0(%arg0: i32, %arg1: i32) -> (i32, i32) {
    %c0_i32 = arith.constant 0 : i32
    %c0_i32_0 = arith.constant 0 : i32
    return %arg0, %c0_i32 : i32, i32
  }
  func.func @transform_1(%arg0: i32, %arg1: i32) -> (i32, i32) {
    %c0_i32 = arith.constant 0 : i32
    %c0_i32_0 = arith.constant 0 : i32
    return %c0_i32, %arg1 : i32, i32
  }
  func.func @transform_2(%arg0: i32, %arg1: i32) -> (i32, i32) {
    %c0_i32 = arith.constant 0 : i32
    %c0_i32_0 = arith.constant 0 : i32
    %c0_i32_1 = arith.constant 0 : i32
    return %c0_i32, %c0_i32_0 : i32, i32
  }
  func.func @transform_3(%arg0: i32, %arg1: i32) -> (i32, i32) {
    %c0_i32 = arith.constant 0 : i32
    %c0_i32_0 = arith.constant 0 : i32
    %c0_i32_1 = arith.constant 0 : i32
    return %c0_i32, %c0_i32_0 : i32, i32
  }
  func.func @transform_4(%arg0: i32, %arg1: i32) -> (i32, i32) {
    %c0_i32 = arith.constant 0 : i32
    return %arg0, %arg1 : i32, i32
  }
}

</mosaic_0001>

<bundles_post_ra>
// kernel: tpu_custom_call.1
= control target key start
LH: loop header
LB: loop body
LE: loop exit
PB: predicated region body
PF: predicated region fallthrough
CT: control target
= control target key end

     0   :  { %9 = vsyncpa [#allocation4], 0  ;;  %s287_s0 = inlined_call_operand.hbm [shape: f32[8,32], index: 0, kind: input, shape index: {}]   ;;  %s288_s1 = inlined_call_operand.vmem [shape: f32[32,128], index: 1, kind: input, shape index: {}]   ;;  %s289_s2 = inlined_call_operand.vmem [shape: f32[32,16], index: 2, kind: input, shape index: {}]   ;;  %s290_s3 = inlined_call_operand.vmem [shape: f32[16,32], index: 3, kind: input, shape index: {}]   ;;  %s291_s4 = inlined_call_operand.hbm [shape: f32[8,128], index: 4, kind: output, shape index: {}]  }
   0x1   :  { %10 = vsyncpa [#allocation5], 0  ;;  %s16_s17 = sshll.u32 %s287_s0, 4  ;;  %s220_s18 = smov [#allocation3]   ;;  %s17_s17 = int_to_ptr.hbm [resolvable:$true] %s16_s17 }
   0x2   :  { %s18_s19 = sshll.u32 %s220_s18, 4  ;;  %s19_s19 = int_to_ptr.vmem [resolvable:$true] %s18_s19 }
   0x3   :  { %21 = dma.hbm_to_vmem [thread:$0]  %s17_s17, 128, %s19_s19, [#allocation4]  }
   0x4   :  { %216 = dma.done.wait [#allocation4], 128  }
   0x5   :  { %217 = vsyncadd [#allocation4], 4294967168  ;;  %v40_v0 = vld [vmem:[%s289_s2 + $0x18] sm:$0xff]  ;;  %v39_v1 = vld [vmem:[%s289_s2 + $0x10] sm:$0xff]  ;;  %vm41_vm0 = vcmask 261120   ;;  %vm68_vm1 = vcmask 130048  }
   0x6   :  { %57 = vmatpush.msra.mxu0 %v40_v0  ;;  %v38_v2 = vld [vmem:[%s289_s2 + $0x8] sm:$0xff]  ;;  %v37_v3 = vld [vmem:[%s289_s2] sm:$0xff]  ;;  %v116_v16 = vld [vmem:[%s288_s1 + $0x18] sm:$0xff]  ;;  %s151_s14 = sshll.u32 %s291_s4, 4  ;;  %s152_s14 = int_to_ptr.hbm [resolvable:$true] %s151_s14 }
   0x7   :  { %v36_v4 = vld [vmem:[#allocation3] sm:$0xff]  ;;  %v66_v6 = vld [vmem:[%s290_s3] sm:$0xff]  ;;  %v115_v17 = vld [vmem:[%s288_s1 + $0x10] sm:$0xff]  ;;  %133 = vmatpush.msra.mxu2 %v116_v16 }
   0x8   :  { %58 = vmatpush.msra.mxu0 %v39_v1  ;;  %v67_v5 = vld [vmem:[%s290_s3 + $0x8] sm:$0xff]  ;;  %v94_v10 = vmul.f32 0.8, %v36_v4  ;;  %v113_v19 = vld [vmem:[%s288_s1] sm:$0xff] }
   0x9   :  { %86 = vmatpush.msra.mxu1 %v67_v5  ;;  %v114_v18 = vld [vmem:[%s288_s1 + $0x8] sm:$0xff]  ;;  %134 = vmatpush.msra.mxu2 %v115_v17  ;;  %s221_s1 = smov [#allocation6]  }
   0xa   :  { %59 = vmatpush.msra.mxu0 %v38_v2  ;;  %s149_s11 = sshll.u32 %s221_s1, 4  ;;  %s150_s11 = int_to_ptr.vmem [resolvable:$true] %s149_s11 }
   0xb   :  { %87 = vmatpush.msra.mxu1 %v66_v6  ;;  %135 = vmatpush.msra.mxu2 %v114_v18 }
   0xc   :  { %60 = vmatpush.msra.mxu0 %v37_v3 }
   0xd   :  { %161 = vmatmul.msk.f32.vlgmr.msra.gmra.mxu0 %vm41_vm0, %v36_v4  ;;  %136 = vmatpush.msra.mxu2 %v113_v19 }
  0x8a   :  { %v62_v7 = vpop.f32.mrf.mxu0 }
  0x8b   :  { %v65_v8 = vmax.f32 %v62_v7, 0.0 }
  0x8d   :  { %162 = vmatmul.msk.f32.vlgmr.msra.gmra.mxu1 %vm68_vm1, %v65_v8 }
 0x10a   :  { %v89_v9 = vpop.f32.mrf.mxu1 }
 0x10b   :  { %v92_v11 = vmax.f32 %v89_v9, 0.0 }
 0x10d   :  { %v93_v12 = vmul.f32 0.2, %v92_v11 }
 0x10f   :  { %v95_v13 = vadd.f32 %v94_v10, %v93_v12 }
 0x111   :  { %v96_v14 = vmul.f32 %v95_v13, %v95_v13 }
 0x113   :  { %v97_v15 = vsel %vm41_vm0, %v96_v14, 0.0 }
 0x114   :  { %98 = vadd.xlane.f32.xlu0 %v97_v15 }
 0x187   :  { %v99_v20 = vpop.xlane.xlu0 %98 }
 0x188   :  { %166 = vrsqrt.f32 %v99_v20  ;;  %vm106_vm3 = vweird.f32 %v99_v20 }
 0x18e   :  { %v167_v21 = vpop.eup %166 }
 0x18f   :  { %v101_v22 = vmul.f32 %v167_v21, %v99_v20  ;;  %vm107_vm2 = vweird.f32 %v167_v21 }
 0x190   :  { %vm108_vm4 = vmor %vm106_vm3, %vm107_vm2 }
 0x191   :  { %v102_v23 = vmul.f32 %v167_v21, %v101_v22 }
 0x193   :  { %v103_v24 = vmul.f32 0.5, %v102_v23 }
 0x195   :  { %v104_v25 = vsub.f32 1.5, %v103_v24 }
 0x197   :  { %v105_v26 = vmul.f32 %v167_v21, %v104_v25 }
 0x199   :  { %v109_v27 = vsel %vm108_vm4, %v167_v21, %v105_v26 }
 0x19a   :  { %v110_v28 = vmul.f32 %v109_v27, %v95_v13 }
 0x19c   :  { %111 = vst.msk [vmem:[#allocation2] sm:$0xff] %vm41_vm0, %v110_v28 }
 0x1a3   :  { %v112_v29 = vld [vmem:[#allocation2] sm:$0xff] }
 0x1a4   :  { %163 = vmatmul.msk.f32.vlgmr.msra.gmra.mxu2 %vm41_vm0, %v112_v29 }
 0x227   :  { %v138_v30 = vpop.f32.mrf.mxu2 }
 0x228   :  { %v141_v31 = vmul.f32 7.389056, %v138_v30 }
 0x22a   :  { %v142_v32 = vadd.f32 -0.7389056, %v141_v31 }
 0x22c   :  { %143 = vst [vmem:[#allocation6] sm:$0xff] %v142_v32 }
 0x22d   :  { %154 = dma.vmem_to_hbm [thread:$0]  %s150_s11, 128, %s152_s14, [#allocation5]  }
 0x22e   :  { %218 = dma.done.wait [#allocation5], 128  }
 0x22f   :  { %219 = vsyncadd [#allocation5], 4294967168 }
 0x230   :  { %159 = vsyncpa [#allocation4], 1 }
 0x231   :  { %160 = vsyncpa [#allocation5], 1 }

// kernel: tpu_custom_call.1
= control target key start
LH: loop header
LB: loop body
LE: loop exit
PB: predicated region body
PF: predicated region fallthrough
CT: control target
= control target key end

     0   :  { %9 = vsyncpa [#allocation4], 0  ;;  %s287_s0 = inlined_call_operand.hbm [shape: f32[8,32], index: 0, kind: input, shape index: {}]   ;;  %s288_s1 = inlined_call_operand.vmem [shape: f32[32,128], index: 1, kind: input, shape index: {}]   ;;  %s289_s2 = inlined_call_operand.vmem [shape: f32[32,16], index: 2, kind: input, shape index: {}]   ;;  %s290_s3 = inlined_call_operand.vmem [shape: f32[16,32], index: 3, kind: input, shape index: {}]   ;;  %s291_s4 = inlined_call_operand.hbm [shape: f32[8,128], index: 4, kind: output, shape index: {}]  }
   0x1   :  { %10 = vsyncpa [#allocation5], 0  ;;  %s16_s17 = sshll.u32 %s287_s0, 4  ;;  %s220_s18 = smov [#allocation3]   ;;  %s17_s17 = int_to_ptr.hbm [resolvable:$true] %s16_s17 }
   0x2   :  { %s18_s19 = sshll.u32 %s220_s18, 4  ;;  %s19_s19 = int_to_ptr.vmem [resolvable:$true] %s18_s19 }
   0x3   :  { %21 = dma.hbm_to_vmem [thread:$0]  %s17_s17, 128, %s19_s19, [#allocation4]  }
   0x4   :  { %216 = dma.done.wait [#allocation4], 128  }
   0x5   :  { %217 = vsyncadd [#allocation4], 4294967168  ;;  %v40_v0 = vld [vmem:[%s289_s2 + $0x18] sm:$0xff]  ;;  %v39_v1 = vld [vmem:[%s289_s2 + $0x10] sm:$0xff]  ;;  %vm41_vm0 = vcmask 261120   ;;  %vm68_vm1 = vcmask 130048  }
   0x6   :  { %57 = vmatpush.msra.mxu0 %v40_v0  ;;  %v38_v2 = vld [vmem:[%s289_s2 + $0x8] sm:$0xff]  ;;  %v37_v3 = vld [vmem:[%s289_s2] sm:$0xff]  ;;  %v116_v16 = vld [vmem:[%s288_s1 + $0x18] sm:$0xff]  ;;  %s151_s14 = sshll.u32 %s291_s4, 4  ;;  %s152_s14 = int_to_ptr.hbm [resolvable:$true] %s151_s14 }
   0x7   :  { %v36_v4 = vld [vmem:[#allocation3] sm:$0xff]  ;;  %v66_v6 = vld [vmem:[%s290_s3] sm:$0xff]  ;;  %v115_v17 = vld [vmem:[%s288_s1 + $0x10] sm:$0xff]  ;;  %133 = vmatpush.msra.mxu2 %v116_v16 }
   0x8   :  { %58 = vmatpush.msra.mxu0 %v39_v1  ;;  %v67_v5 = vld [vmem:[%s290_s3 + $0x8] sm:$0xff]  ;;  %v94_v10 = vmul.f32 0.8, %v36_v4  ;;  %v113_v19 = vld [vmem:[%s288_s1] sm:$0xff] }
   0x9   :  { %86 = vmatpush.msra.mxu1 %v67_v5  ;;  %v114_v18 = vld [vmem:[%s288_s1 + $0x8] sm:$0xff]  ;;  %134 = vmatpush.msra.mxu2 %v115_v17  ;;  %s221_s1 = smov [#allocation6]  }
   0xa   :  { %59 = vmatpush.msra.mxu0 %v38_v2  ;;  %s149_s11 = sshll.u32 %s221_s1, 4  ;;  %s150_s11 = int_to_ptr.vmem [resolvable:$true] %s149_s11 }
   0xb   :  { %87 = vmatpush.msra.mxu1 %v66_v6  ;;  %135 = vmatpush.msra.mxu2 %v114_v18 }
   0xc   :  { %60 = vmatpush.msra.mxu0 %v37_v3 }
   0xd   :  { %161 = vmatmul.msk.f32.vlgmr.msra.gmra.mxu0 %vm41_vm0, %v36_v4  ;;  %136 = vmatpush.msra.mxu2 %v113_v19 }
  0x8a   :  { %v62_v7 = vpop.f32.mrf.mxu0 }
  0x8b   :  { %v65_v8 = vmax.f32 %v62_v7, 0.0 }
  0x8d   :  { %162 = vmatmul.msk.f32.vlgmr.msra.gmra.mxu1 %vm68_vm1, %v65_v8 }
 0x10a   :  { %v89_v9 = vpop.f32.mrf.mxu1 }
 0x10b   :  { %v92_v11 = vmax.f32 %v89_v9, 0.0 }
 0x10d   :  { %v93_v12 = vmul.f32 0.2, %v92_v11 }
 0x10f   :  { %v95_v13 = vadd.f32 %v94_v10, %v93_v12 }
 0x111   :  { %v96_v14 = vmul.f32 %v95_v13, %v95_v13 }
 0x113   :  { %v97_v15 = vsel %vm41_vm0, %v96_v14, 0.0 }
 0x114   :  { %98 = vadd.xlane.f32.xlu0 %v97_v15 }
 0x187   :  { %v99_v20 = vpop.xlane.xlu0 %98 }
 0x188   :  { %166 = vrsqrt.f32 %v99_v20  ;;  %vm106_vm3 = vweird.f32 %v99_v20 }
 0x18e   :  { %v167_v21 = vpop.eup %166 }
 0x18f   :  { %v101_v22 = vmul.f32 %v167_v21, %v99_v20  ;;  %vm107_vm2 = vweird.f32 %v167_v21 }
 0x190   :  { %vm108_vm4 = vmor %vm106_vm3, %vm107_vm2 }
 0x191   :  { %v102_v23 = vmul.f32 %v167_v21, %v101_v22 }
 0x193   :  { %v103_v24 = vmul.f32 0.5, %v102_v23 }
 0x195   :  { %v104_v25 = vsub.f32 1.5, %v103_v24 }
 0x197   :  { %v105_v26 = vmul.f32 %v167_v21, %v104_v25 }
 0x199   :  { %v109_v27 = vsel %vm108_vm4, %v167_v21, %v105_v26 }
 0x19a   :  { %v110_v28 = vmul.f32 %v109_v27, %v95_v13 }
 0x19c   :  { %111 = vst.msk [vmem:[#allocation2] sm:$0xff] %vm41_vm0, %v110_v28 }
 0x1a3   :  { %v112_v29 = vld [vmem:[#allocation2] sm:$0xff] }
 0x1a4   :  { %163 = vmatmul.msk.f32.vlgmr.msra.gmra.mxu2 %vm41_vm0, %v112_v29 }
 0x227   :  { %v138_v30 = vpop.f32.mrf.mxu2 }
 0x228   :  { %v141_v31 = vmul.f32 7.389056, %v138_v30 }
 0x22a   :  { %v142_v32 = vadd.f32 -0.7389056, %v141_v31 }
 0x22c   :  { %143 = vst [vmem:[#allocation6] sm:$0xff] %v142_v32 }
 0x22d   :  { %154 = dma.vmem_to_hbm [thread:$0]  %s150_s11, 128, %s152_s14, [#allocation5]  }
 0x22e   :  { %218 = dma.done.wait [#allocation5], 128  }
 0x22f   :  { %219 = vsyncadd [#allocation5], 4294967168 }
 0x230   :  { %159 = vsyncpa [#allocation4], 1 }
 0x231   :  { %160 = vsyncpa [#allocation5], 1 }

</bundles_post_ra>
